<compile_context>
chip_gen: v7x
topology: tpu7x:2x2x1
jax: 0.10.0
libtpu: 0.0.40
codegen_flags: <defaults>
</compile_context>

<pallas_src>
import jax
import jax.numpy as jnp
from jax.experimental import pallas as pl
from jax.experimental.pallas import tpu as pltpu


NEG_INF = -1e9  # torch uses -1000000000.0


def _generator_kernel(x_ref,      # (Bb*T, D)  bf16/f32  flattened activations
                      src_ref,    # (Bb, T)    int32
                      mask_ref,   # (Bb, V)    f32   exist mask (1 keep / 0 masked)
                      emb_ref,    # (2,)       f32   Embedding(2,1) table, in SMEM
                      wlin_ref,   # (D, V)     bf16/f32  W_lin^T
                      blin_ref,   # (1, V)     f32
                      wpos_ref,   # (T, T)     f32   W_pos^T
                      bpos_ref,   # (1, T)     f32
                      out_ref):   # (Bb, V)    f32
    Bb, T = src_ref.shape
    V = out_ref.shape[-1]

    # 1) vocab logits for every (batch, position) row in ONE MXU matmul
    #    (bf16 inputs by default, f32 accumulation), bias added on the flat
    #    (Bb*T, V) layout.
    logits = jnp.dot(x_ref[...], wlin_ref[...],
                     preferred_element_type=jnp.float32) + blin_ref[...]
    # Splitting the leading dim is free because T is a multiple of the 8-row
    # sublane tile (keep max_len a multiple of 8).
    logits = logits.reshape(Bb, T, V)

    # 2) masked_fill(exist_mask == 0, -1e9): one compare, broadcast over T.
    keep = (mask_ref[...] != 0.0)[:, None, :]        # (Bb, 1, V)
    logits = jnp.where(keep, logits, NEG_INF)

    # 3) softmax over the vocab axis (torch: exp(log_softmax) == softmax).
    #    EUP approximate reciprocal + one Newton refinement -> ~f32 accuracy.
    m = jnp.max(logits, axis=-1, keepdims=True)
    e = jnp.exp(logits - m)
    d = jnp.sum(e, axis=-1, keepdims=True)
    r = pl.reciprocal(d, approx=True)
    r = r * (2.0 - d * r)
    p = e * r                                        # (Bb, T, V) f32

    # 4) positional importance: relu(embed(src != 0) @ W_pos^T + b_pos), f32.
    #    The 2-row embedding lookup is a select between two SMEM scalars.
    e0 = emb_ref[0]
    e1 = emb_ref[1]
    emb = jnp.where(src_ref[...] != 0, e1, e0)       # (Bb, T) f32
    w = jnp.dot(emb, wpos_ref[...], preferred_element_type=jnp.float32)
    w = jnp.maximum(w + bpos_ref[...], 0.0)          # (Bb, T)

    # 5) scores[b, v] = sum_t w[b, t] * p[b, t, v]
    #    == torch's (p.transpose(1,2) @ weight).squeeze(-1), computed as a VPU
    #    multiply + sublane reduce in f32 (MXU stays free, no bf16 cast of p).
    scores = jnp.sum(p * w[:, :, None], axis=1)      # (Bb, V)

    # 6) torch applies log_softmax twice (second is an exact identity up to fp).
    def _log_softmax(z):
        zm = jnp.max(z, axis=-1, keepdims=True)
        zs = z - zm
        return zs - jnp.log(jnp.sum(jnp.exp(zs), axis=-1, keepdims=True))

    out_ref[...] = _log_softmax(_log_softmax(scores))


def _default_block_b(B, T, D, V, x_itemsize):
    """Pick a batch block from a per-step VMEM budget (conservative for v7x)."""
    per_row = (2 * T * D * x_itemsize        # double-buffered x tile
               + 2 * T * V * 4               # logits + p f32 temporaries
               + 2 * (T * 4 + 2 * V * 4))    # double-buffered src/mask/out
    budget = 16 << 20                        # per-step blocks; fits v7x's 64 MiB VMEM
    cap = max(8, (budget // per_row) // 8 * 8)
    if B <= 16:
        return B                             # blocks equal full dims; no alignment issue
    if cap >= B:
        # Whole batch fits in one step; still keep >= 2 grid steps so a 2-TC
        # chip (v7x) puts both TensorCores to work on the "parallel" axis.
        half = ((B + 1) // 2 + 7) // 8 * 8
        return half if half < B else B
    # Prefer an 8-aligned block that divides B (avoids jnp.pad of the x stream).
    b = cap
    while b >= 8:
        if B % b == 0:
            return b
        b -= 8
    return cap


def generator_forward(x, src, exist_mask, params, *, block_b=None,
                      matmul_dtype=jnp.bfloat16):
    """x: (B, T, D) f32, src: (B, T) int, exist_mask: (B, V) f32 -> (B, V) f32."""
    B, T, D = x.shape
    V = params["lin_w"].shape[1]

    x_itemsize = jnp.dtype(matmul_dtype).itemsize
    if block_b is None:
        block_b = _default_block_b(B, T, D, V, x_itemsize)
    block_b = min(block_b, B) if block_b > 0 else B

    grid_b = pl.cdiv(B, block_b)
    Bpad = grid_b * block_b

    def pad_b(a):
        if Bpad == B:
            return a
        return jnp.pad(a, [(0, Bpad - B)] + [(0, 0)] * (a.ndim - 1))

    # Wrapper-side layout plumbing only (no compute moved out of the kernel).
    x_flat = pad_b(x.astype(matmul_dtype)).reshape(Bpad * T, D)
    src2d = pad_b(src.astype(jnp.int32))                    # (Bpad, T)
    mask2d = pad_b(exist_mask.astype(jnp.float32))          # (Bpad, V)

    emb_tab = params["embed"].astype(jnp.float32).reshape(2)   # SMEM scalars
    lin_w = params["lin_w"].astype(matmul_dtype)                # (D, V) bf16
    lin_b = params["lin_b"].astype(jnp.float32).reshape(1, V)
    pos_w = params["pos_w"].astype(jnp.float32)                 # (T, T) f32
    pos_b = params["pos_b"].astype(jnp.float32).reshape(1, T)

    def _weight_spec(shape, mode):
        idx = lambda b: (0,) * len(shape)
        if mode is None:
            return pl.BlockSpec(shape, idx)
        return pl.BlockSpec(shape, idx, pipeline_mode=mode)

    def _call(weight_mode):
        grid_spec = pltpu.PrefetchScalarGridSpec(
            num_scalar_prefetch=0,
            grid=(grid_b,),
            in_specs=[
                pl.BlockSpec((block_b * T, D), lambda b: (b, 0)),   # activations
                pl.BlockSpec((block_b, T), lambda b: (b, 0)),       # src
                pl.BlockSpec((block_b, V), lambda b: (b, 0)),       # exist mask
                pl.BlockSpec(memory_space=pltpu.MemorySpace.SMEM),  # embed table
                _weight_spec((D, V), weight_mode),                  # W_lin^T
                _weight_spec((1, V), weight_mode),                  # b_lin
                _weight_spec((T, T), weight_mode),                  # W_pos^T
                _weight_spec((1, T), weight_mode),                  # b_pos
            ],
            out_specs=pl.BlockSpec((block_b, V), lambda b: (b, 0)),
        )
        return pl.pallas_call(
            _generator_kernel,
            out_shape=jax.ShapeDtypeStruct((Bpad, V), jnp.float32),
            grid_spec=grid_spec,
            compiler_params=pltpu.CompilerParams(
                dimension_semantics=("parallel",),
                vmem_limit_bytes=40 << 20),
        )(x_flat, src2d, mask2d, emb_tab, lin_w, lin_b, pos_w, pos_b)

    try:
        # Single-buffer the grid-invariant weights (they never change across steps).
        out = _call(pl.Buffered(1))
    except Exception:
        # Fallback for jax versions without per-BlockSpec pipeline_mode.
        out = _call(None)

    return out[:B]


def generator_reference(x, src, exist_mask, params):
    """Pure-JAX mirror of the torch forward, for correctness checking."""
    e = params["embed"][(src != 0).astype(jnp.int32)]                 # (B, T)
    w = jax.nn.relu(e @ params["pos_w"] + params["pos_b"])            # (B, T)
    logits = jnp.einsum("btd,dv->btv", x, params["lin_w"]) + params["lin_b"]
    masked = jnp.where(exist_mask[:, None, :] == 0.0, NEG_INF, logits)
    p = jnp.exp(jax.nn.log_softmax(masked, axis=-1))                  # (B, T, V)
    scores = jnp.einsum("btv,bt->bv", p, w)                           # (B, V)
    return jax.nn.log_softmax(jax.nn.log_softmax(scores, axis=-1), axis=-1)


def init_params(key, d_model, vocab_size, max_len):
    # Weights stored in (in_features, out_features) layout (i.e. torch W^T).
    k = jax.random.split(key, 3)
    return {
        "lin_w": 0.3 * jax.random.normal(k[0], (d_model, vocab_size), jnp.float32),
        "lin_b": 0.01 * jnp.ones((vocab_size,), jnp.float32),
        "pos_w": 0.3 * jax.random.normal(k[1], (max_len, max_len), jnp.float32),
        "pos_b": 0.1 * jnp.ones((max_len,), jnp.float32),
        "embed": jax.random.normal(k[2], (2,), jnp.float32),
    }


if __name__ == "__main__":
    B, T, D, V = 2, 8, 32, 28   # batch, max_len, d_model, vocab_size

    key = jax.random.PRNGKey(0)
    kx, ks, kp = jax.random.split(key, 3)
    x = jax.random.normal(kx, (B, T, D), jnp.float32)
    src = jax.random.randint(ks, (B, T), 0, 3, dtype=jnp.int32)   # contains zeros
    exist_mask = jnp.ones((B, V), jnp.float32)
    exist_mask = exist_mask.at[0, :5].set(0.0)
    exist_mask = exist_mask.at[1, 10:14].set(0.0)

    params = init_params(kp, D, V, T)

    out = generator_forward(x, src, exist_mask, params)
    out = jax.block_until_ready(out)

    ref = generator_reference(x, src, exist_mask, params)
    assert out.shape == (B, V)
    # Tolerance covers bf16 MXU inputs for the x @ W_lin matmul (f32 accumulation);
    # everything downstream (softmax, weighting, log_softmax) stays in f32.
    assert jnp.allclose(out, ref, rtol=2e-2, atol=2e-2), "kernel mismatch vs reference"

    print("KERNEL_OK")
</pallas_src>

<mosaic_0001>
module attributes {stable_mosaic.version = 11 : i64} {
  func.func @_generator_kernel(%arg0: i32, %arg1: memref<16x32xbf16, #tpu.memory_space<vmem>>, %arg2: memref<2x8xi32, #tpu.memory_space<vmem>>, %arg3: memref<2x28xf32, #tpu.memory_space<vmem>>, %arg4: memref<2xf32, #tpu.memory_space<smem>>, %arg5: memref<32x28xbf16, #tpu.memory_space<vmem>>, %arg6: memref<1x28xf32, #tpu.memory_space<vmem>>, %arg7: memref<8x8xf32, #tpu.memory_space<vmem>>, %arg8: memref<1x8xf32, #tpu.memory_space<vmem>>, %arg9: memref<2x28xf32, #tpu.memory_space<vmem>>) attributes {dimension_semantics = [#tpu.dimension_semantics<parallel>], iteration_bounds = array<i64: 1>, scalar_prefetch = 0 : i64, scratch_operands = 0 : i64, tpu.core_type = #tpu.core_type<tc>, window_params = [{transform_indices = @transform_0, window_bounds = array<i64: 16, 32>}, {transform_indices = @transform_1, window_bounds = array<i64: 2, 8>}, {transform_indices = @transform_2, window_bounds = array<i64: 2, 28>}, {transform_indices = @transform_3, window_bounds = array<i64: 2>}, {pipeline_mode = #tpu.pipeline_mode<synchronous>, transform_indices = @transform_4, window_bounds = array<i64: 32, 28>}, {pipeline_mode = #tpu.pipeline_mode<synchronous>, transform_indices = @transform_5, window_bounds = array<i64: 1, 28>}, {pipeline_mode = #tpu.pipeline_mode<synchronous>, transform_indices = @transform_6, window_bounds = array<i64: 8, 8>}, {pipeline_mode = #tpu.pipeline_mode<synchronous>, transform_indices = @transform_7, window_bounds = array<i64: 1, 8>}, {transform_indices = @transform_8, window_bounds = array<i64: 2, 28>}]} {
    %c0 = arith.constant 0 : index
    %c0_0 = arith.constant 0 : index
    %0 = vector.load %arg1[%c0, %c0_0] : memref<16x32xbf16, #tpu.memory_space<vmem>>, vector<16x32xbf16>
    %c0_1 = arith.constant 0 : index
    %c0_2 = arith.constant 0 : index
    %1 = vector.load %arg5[%c0_1, %c0_2] : memref<32x28xbf16, #tpu.memory_space<vmem>>, vector<32x28xbf16>
    %cst = arith.constant dense<0.000000e+00> : vector<16x28xf32>
    %2 = tpu.matmul %0, %1, %cst {dimension_numbers = #tpu.dot_dimension_numbers<[1], [0], [0], [1], [0, 0, 1, 1], [], []>} : vector<16x32xbf16>, vector<32x28xbf16>, vector<16x28xf32> -> vector<16x28xf32>
    %c0_3 = arith.constant 0 : index
    %c0_4 = arith.constant 0 : index
    %3 = vector.load %arg6[%c0_3, %c0_4] : memref<1x28xf32, #tpu.memory_space<vmem>>, vector<1x28xf32>
    %4 = vector.broadcast %3 : vector<1x28xf32> to vector<16x28xf32>
    %5 = arith.addf %2, %4 : vector<16x28xf32>
    %6 = vector.shape_cast %5 : vector<16x28xf32> to vector<2x8x28xf32>
    %c0_5 = arith.constant 0 : index
    %c0_6 = arith.constant 0 : index
    %7 = vector.load %arg3[%c0_5, %c0_6] : memref<2x28xf32, #tpu.memory_space<vmem>>, vector<2x28xf32>
    %cst_7 = arith.constant 0.000000e+00 : f32
    %8 = vector.broadcast %cst_7 : f32 to vector<2x28xf32>
    %9 = arith.cmpf one, %7, %8 : vector<2x28xf32>
    %10 = vector.shape_cast %9 : vector<2x28xi1> to vector<2x1x28xi1>
    %cst_8 = arith.constant -1.000000e+09 : f32
    %11 = vector.shape_cast %10 : vector<2x1x28xi1> to vector<2x1x28xi1>
    %12 = vector.broadcast %11 : vector<2x1x28xi1> to vector<2x8x28xi1>
    %13 = vector.broadcast %cst_8 : f32 to vector<2x8x28xf32>
    %14 = arith.select %12, %6, %13 : vector<2x8x28xi1>, vector<2x8x28xf32>
    %cst_9 = arith.constant dense<0xFF800000> : vector<2x8xf32>
    %15 = vector.multi_reduction <maximumf>, %14, %cst_9 [2] : vector<2x8x28xf32> to vector<2x8xf32>
    %16 = vector.shape_cast %15 : vector<2x8xf32> to vector<2x8x1xf32>
    %17 = vector.broadcast %16 : vector<2x8x1xf32> to vector<2x8x28xf32>
    %18 = arith.subf %14, %17 : vector<2x8x28xf32>
    %19 = math.exp %18 : vector<2x8x28xf32>
    %cst_10 = arith.constant dense<0.000000e+00> : vector<2x8xf32>
    %20 = vector.multi_reduction <add>, %19, %cst_10 [2] : vector<2x8x28xf32> to vector<2x8xf32>
    %21 = vector.shape_cast %20 : vector<2x8xf32> to vector<2x8x1xf32>
    %22 = tpu.reciprocal %21 {approx = true} : vector<2x8x1xf32> -> vector<2x8x1xf32>
    %23 = arith.mulf %21, %22 : vector<2x8x1xf32>
    %cst_11 = arith.constant 2.000000e+00 : f32
    %24 = vector.broadcast %cst_11 : f32 to vector<2x8x1xf32>
    %25 = arith.subf %24, %23 : vector<2x8x1xf32>
    %26 = arith.mulf %22, %25 : vector<2x8x1xf32>
    %27 = vector.broadcast %26 : vector<2x8x1xf32> to vector<2x8x28xf32>
    %28 = arith.mulf %19, %27 : vector<2x8x28xf32>
    %c0_12 = arith.constant 0 : index
    %29 = memref.load %arg4[%c0_12] : memref<2xf32, #tpu.memory_space<smem>>
    %c1 = arith.constant 1 : index
    %30 = memref.load %arg4[%c1] : memref<2xf32, #tpu.memory_space<smem>>
    %c0_13 = arith.constant 0 : index
    %c0_14 = arith.constant 0 : index
    %31 = vector.load %arg2[%c0_13, %c0_14] : memref<2x8xi32, #tpu.memory_space<vmem>>, vector<2x8xi32>
    %c0_i32 = arith.constant 0 : i32
    %32 = vector.broadcast %c0_i32 : i32 to vector<2x8xi32>
    %33 = arith.cmpi ne, %31, %32 : vector<2x8xi32>
    %34 = vector.broadcast %30 : f32 to vector<2x8xf32>
    %35 = vector.broadcast %29 : f32 to vector<2x8xf32>
    %36 = arith.select %33, %34, %35 : vector<2x8xi1>, vector<2x8xf32>
    %c0_15 = arith.constant 0 : index
    %c0_16 = arith.constant 0 : index
    %37 = vector.load %arg7[%c0_15, %c0_16] : memref<8x8xf32, #tpu.memory_space<vmem>>, vector<8x8xf32>
    %cst_17 = arith.constant dense<0.000000e+00> : vector<2x8xf32>
    %38 = tpu.matmul %36, %37, %cst_17 {dimension_numbers = #tpu.dot_dimension_numbers<[1], [0], [0], [1], [0, 0, 1, 1], [], []>} : vector<2x8xf32>, vector<8x8xf32>, vector<2x8xf32> -> vector<2x8xf32>
    %c0_18 = arith.constant 0 : index
    %c0_19 = arith.constant 0 : index
    %39 = vector.load %arg8[%c0_18, %c0_19] : memref<1x8xf32, #tpu.memory_space<vmem>>, vector<1x8xf32>
    %40 = vector.broadcast %39 : vector<1x8xf32> to vector<2x8xf32>
    %41 = arith.addf %38, %40 : vector<2x8xf32>
    %cst_20 = arith.constant 0.000000e+00 : f32
    %42 = vector.broadcast %cst_20 : f32 to vector<2x8xf32>
    %43 = arith.maximumf %41, %42 : vector<2x8xf32>
    %44 = vector.shape_cast %43 : vector<2x8xf32> to vector<2x8x1xf32>
    %45 = vector.broadcast %44 : vector<2x8x1xf32> to vector<2x8x28xf32>
    %46 = arith.mulf %28, %45 : vector<2x8x28xf32>
    %cst_21 = arith.constant dense<0.000000e+00> : vector<2x28xf32>
    %47 = vector.multi_reduction <add>, %46, %cst_21 [1] : vector<2x8x28xf32> to vector<2x28xf32>
    %cst_22 = arith.constant dense<0xFF800000> : vector<2xf32>
    %48 = vector.multi_reduction <maximumf>, %47, %cst_22 [1] : vector<2x28xf32> to vector<2xf32>
    %49 = vector.shape_cast %48 : vector<2xf32> to vector<2x1xf32>
    %50 = vector.broadcast %49 : vector<2x1xf32> to vector<2x28xf32>
    %51 = arith.subf %47, %50 : vector<2x28xf32>
    %52 = math.exp %51 : vector<2x28xf32>
    %cst_23 = arith.constant dense<0.000000e+00> : vector<2xf32>
    %53 = vector.multi_reduction <add>, %52, %cst_23 [1] : vector<2x28xf32> to vector<2xf32>
    %54 = vector.shape_cast %53 : vector<2xf32> to vector<2x1xf32>
    %55 = math.log %54 : vector<2x1xf32>
    %56 = vector.broadcast %55 : vector<2x1xf32> to vector<2x28xf32>
    %57 = arith.subf %51, %56 : vector<2x28xf32>
    %cst_24 = arith.constant dense<0xFF800000> : vector<2xf32>
    %58 = vector.multi_reduction <maximumf>, %57, %cst_24 [1] : vector<2x28xf32> to vector<2xf32>
    %59 = vector.shape_cast %58 : vector<2xf32> to vector<2x1xf32>
    %60 = vector.broadcast %59 : vector<2x1xf32> to vector<2x28xf32>
    %61 = arith.subf %57, %60 : vector<2x28xf32>
    %62 = math.exp %61 : vector<2x28xf32>
    %cst_25 = arith.constant dense<0.000000e+00> : vector<2xf32>
    %63 = vector.multi_reduction <add>, %62, %cst_25 [1] : vector<2x28xf32> to vector<2xf32>
    %64 = vector.shape_cast %63 : vector<2xf32> to vector<2x1xf32>
    %65 = math.log %64 : vector<2x1xf32>
    %66 = vector.broadcast %65 : vector<2x1xf32> to vector<2x28xf32>
    %67 = arith.subf %61, %66 : vector<2x28xf32>
    %c0_26 = arith.constant 0 : index
    %c0_27 = arith.constant 0 : index
    %68 = vector.load %arg9[%c0_26, %c0_27] : memref<2x28xf32, #tpu.memory_space<vmem>>, vector<2x28xf32>
    tpu.vector_store %arg9[%c0_26, %c0_27], %67 {strides = array<i32>} : memref<2x28xf32, #tpu.memory_space<vmem>>, vector<2x28xf32>,
    return
  }
  func.func @transform_0(%arg0: i32) -> (i32, i32) {
    %c0_i32 = arith.constant 0 : i32
    %c0_i32_0 = arith.constant 0 : i32
    return %arg0, %c0_i32 : i32, i32
  }
  func.func @transform_1(%arg0: i32) -> (i32, i32) {
    %c0_i32 = arith.constant 0 : i32
    %c0_i32_0 = arith.constant 0 : i32
    return %arg0, %c0_i32 : i32, i32
  }
  func.func @transform_2(%arg0: i32) -> (i32, i32) {
    %c0_i32 = arith.constant 0 : i32
    %c0_i32_0 = arith.constant 0 : i32
    return %arg0, %c0_i32 : i32, i32
  }
  func.func @transform_3(%arg0: i32) -> i32 {
    %c0_i32 = arith.constant 0 : i32
    %c0_i32_0 = arith.constant 0 : i32
    return %c0_i32 : i32
  }
  func.func @transform_4(%arg0: i32) -> (i32, i32) {
    %c0_i32 = arith.constant 0 : i32
    %c0_i32_0 = arith.constant 0 : i32
    %c0_i32_1 = arith.constant 0 : i32
    return %c0_i32, %c0_i32_0 : i32, i32
  }
  func.func @transform_5(%arg0: i32) -> (i32, i32) {
    %c0_i32 = arith.constant 0 : i32
    %c0_i32_0 = arith.constant 0 : i32
    %c0_i32_1 = arith.constant 0 : i32
    return %c0_i32, %c0_i32_0 : i32, i32
  }
  func.func @transform_6(%arg0: i32) -> (i32, i32) {
    %c0_i32 = arith.constant 0 : i32
    %c0_i32_0 = arith.constant 0 : i32
    %c0_i32_1 = arith.constant 0 : i32
    return %c0_i32, %c0_i32_0 : i32, i32
  }
  func.func @transform_7(%arg0: i32) -> (i32, i32) {
    %c0_i32 = arith.constant 0 : i32
    %c0_i32_0 = arith.constant 0 : i32
    %c0_i32_1 = arith.constant 0 : i32
    return %c0_i32, %c0_i32_0 : i32, i32
  }
  func.func @transform_8(%arg0: i32) -> (i32, i32) {
    %c0_i32 = arith.constant 0 : i32
    %c0_i32_0 = arith.constant 0 : i32
    return %arg0, %c0_i32 : i32, i32
  }
}

module attributes {stable_mosaic.version = 11 : i64} {
  func.func @_generator_kernel(%arg0: i32, %arg1: memref<16x32xbf16, #tpu.memory_space<vmem>>, %arg2: memref<2x8xi32, #tpu.memory_space<vmem>>, %arg3: memref<2x28xf32, #tpu.memory_space<vmem>>, %arg4: memref<2xf32, #tpu.memory_space<smem>>, %arg5: memref<32x28xbf16, #tpu.memory_space<vmem>>, %arg6: memref<1x28xf32, #tpu.memory_space<vmem>>, %arg7: memref<8x8xf32, #tpu.memory_space<vmem>>, %arg8: memref<1x8xf32, #tpu.memory_space<vmem>>, %arg9: memref<2x28xf32, #tpu.memory_space<vmem>>) attributes {dimension_semantics = [#tpu.dimension_semantics<parallel>], iteration_bounds = array<i64: 1>, scalar_prefetch = 0 : i64, scratch_operands = 0 : i64, tpu.core_type = #tpu.core_type<tc>, window_params = [{transform_indices = @transform_0, window_bounds = array<i64: 16, 32>}, {transform_indices = @transform_1, window_bounds = array<i64: 2, 8>}, {transform_indices = @transform_2, window_bounds = array<i64: 2, 28>}, {transform_indices = @transform_3, window_bounds = array<i64: 2>}, {pipeline_mode = #tpu.pipeline_mode<synchronous>, transform_indices = @transform_4, window_bounds = array<i64: 32, 28>}, {pipeline_mode = #tpu.pipeline_mode<synchronous>, transform_indices = @transform_5, window_bounds = array<i64: 1, 28>}, {pipeline_mode = #tpu.pipeline_mode<synchronous>, transform_indices = @transform_6, window_bounds = array<i64: 8, 8>}, {pipeline_mode = #tpu.pipeline_mode<synchronous>, transform_indices = @transform_7, window_bounds = array<i64: 1, 8>}, {transform_indices = @transform_8, window_bounds = array<i64: 2, 28>}]} {
    %c0 = arith.constant 0 : index
    %c0_0 = arith.constant 0 : index
    %0 = vector.load %arg1[%c0, %c0_0] : memref<16x32xbf16, #tpu.memory_space<vmem>>, vector<16x32xbf16>
    %c0_1 = arith.constant 0 : index
    %c0_2 = arith.constant 0 : index
    %1 = vector.load %arg5[%c0_1, %c0_2] : memref<32x28xbf16, #tpu.memory_space<vmem>>, vector<32x28xbf16>
    %cst = arith.constant dense<0.000000e+00> : vector<16x28xf32>
    %2 = tpu.matmul %0, %1, %cst {dimension_numbers = #tpu.dot_dimension_numbers<[1], [0], [0], [1], [0, 0, 1, 1], [], []>} : vector<16x32xbf16>, vector<32x28xbf16>, vector<16x28xf32> -> vector<16x28xf32>
    %c0_3 = arith.constant 0 : index
    %c0_4 = arith.constant 0 : index
    %3 = vector.load %arg6[%c0_3, %c0_4] : memref<1x28xf32, #tpu.memory_space<vmem>>, vector<1x28xf32>
    %4 = vector.broadcast %3 : vector<1x28xf32> to vector<16x28xf32>
    %5 = arith.addf %2, %4 : vector<16x28xf32>
    %6 = vector.shape_cast %5 : vector<16x28xf32> to vector<2x8x28xf32>
    %c0_5 = arith.constant 0 : index
    %c0_6 = arith.constant 0 : index
    %7 = vector.load %arg3[%c0_5, %c0_6] : memref<2x28xf32, #tpu.memory_space<vmem>>, vector<2x28xf32>
    %cst_7 = arith.constant 0.000000e+00 : f32
    %8 = vector.broadcast %cst_7 : f32 to vector<2x28xf32>
    %9 = arith.cmpf one, %7, %8 : vector<2x28xf32>
    %10 = vector.shape_cast %9 : vector<2x28xi1> to vector<2x1x28xi1>
    %cst_8 = arith.constant -1.000000e+09 : f32
    %11 = vector.shape_cast %10 : vector<2x1x28xi1> to vector<2x1x28xi1>
    %12 = vector.broadcast %11 : vector<2x1x28xi1> to vector<2x8x28xi1>
    %13 = vector.broadcast %cst_8 : f32 to vector<2x8x28xf32>
    %14 = arith.select %12, %6, %13 : vector<2x8x28xi1>, vector<2x8x28xf32>
    %cst_9 = arith.constant dense<0xFF800000> : vector<2x8xf32>
    %15 = vector.multi_reduction <maximumf>, %14, %cst_9 [2] : vector<2x8x28xf32> to vector<2x8xf32>
    %16 = vector.shape_cast %15 : vector<2x8xf32> to vector<2x8x1xf32>
    %17 = vector.broadcast %16 : vector<2x8x1xf32> to vector<2x8x28xf32>
    %18 = arith.subf %14, %17 : vector<2x8x28xf32>
    %19 = math.exp %18 : vector<2x8x28xf32>
    %cst_10 = arith.constant dense<0.000000e+00> : vector<2x8xf32>
    %20 = vector.multi_reduction <add>, %19, %cst_10 [2] : vector<2x8x28xf32> to vector<2x8xf32>
    %21 = vector.shape_cast %20 : vector<2x8xf32> to vector<2x8x1xf32>
    %22 = tpu.reciprocal %21 {approx = true} : vector<2x8x1xf32> -> vector<2x8x1xf32>
    %23 = arith.mulf %21, %22 : vector<2x8x1xf32>
    %cst_11 = arith.constant 2.000000e+00 : f32
    %24 = vector.broadcast %cst_11 : f32 to vector<2x8x1xf32>
    %25 = arith.subf %24, %23 : vector<2x8x1xf32>
    %26 = arith.mulf %22, %25 : vector<2x8x1xf32>
    %27 = vector.broadcast %26 : vector<2x8x1xf32> to vector<2x8x28xf32>
    %28 = arith.mulf %19, %27 : vector<2x8x28xf32>
    %c0_12 = arith.constant 0 : index
    %29 = memref.load %arg4[%c0_12] : memref<2xf32, #tpu.memory_space<smem>>
    %c1 = arith.constant 1 : index
    %30 = memref.load %arg4[%c1] : memref<2xf32, #tpu.memory_space<smem>>
    %c0_13 = arith.constant 0 : index
    %c0_14 = arith.constant 0 : index
    %31 = vector.load %arg2[%c0_13, %c0_14] : memref<2x8xi32, #tpu.memory_space<vmem>>, vector<2x8xi32>
    %c0_i32 = arith.constant 0 : i32
    %32 = vector.broadcast %c0_i32 : i32 to vector<2x8xi32>
    %33 = arith.cmpi ne, %31, %32 : vector<2x8xi32>
    %34 = vector.broadcast %30 : f32 to vector<2x8xf32>
    %35 = vector.broadcast %29 : f32 to vector<2x8xf32>
    %36 = arith.select %33, %34, %35 : vector<2x8xi1>, vector<2x8xf32>
    %c0_15 = arith.constant 0 : index
    %c0_16 = arith.constant 0 : index
    %37 = vector.load %arg7[%c0_15, %c0_16] : memref<8x8xf32, #tpu.memory_space<vmem>>, vector<8x8xf32>
    %cst_17 = arith.constant dense<0.000000e+00> : vector<2x8xf32>
    %38 = tpu.matmul %36, %37, %cst_17 {dimension_numbers = #tpu.dot_dimension_numbers<[1], [0], [0], [1], [0, 0, 1, 1], [], []>} : vector<2x8xf32>, vector<8x8xf32>, vector<2x8xf32> -> vector<2x8xf32>
    %c0_18 = arith.constant 0 : index
    %c0_19 = arith.constant 0 : index
    %39 = vector.load %arg8[%c0_18, %c0_19] : memref<1x8xf32, #tpu.memory_space<vmem>>, vector<1x8xf32>
    %40 = vector.broadcast %39 : vector<1x8xf32> to vector<2x8xf32>
    %41 = arith.addf %38, %40 : vector<2x8xf32>
    %cst_20 = arith.constant 0.000000e+00 : f32
    %42 = vector.broadcast %cst_20 : f32 to vector<2x8xf32>
    %43 = arith.maximumf %41, %42 : vector<2x8xf32>
    %44 = vector.shape_cast %43 : vector<2x8xf32> to vector<2x8x1xf32>
    %45 = vector.broadcast %44 : vector<2x8x1xf32> to vector<2x8x28xf32>
    %46 = arith.mulf %28, %45 : vector<2x8x28xf32>
    %cst_21 = arith.constant dense<0.000000e+00> : vector<2x28xf32>
    %47 = vector.multi_reduction <add>, %46, %cst_21 [1] : vector<2x8x28xf32> to vector<2x28xf32>
    %cst_22 = arith.constant dense<0xFF800000> : vector<2xf32>
    %48 = vector.multi_reduction <maximumf>, %47, %cst_22 [1] : vector<2x28xf32> to vector<2xf32>
    %49 = vector.shape_cast %48 : vector<2xf32> to vector<2x1xf32>
    %50 = vector.broadcast %49 : vector<2x1xf32> to vector<2x28xf32>
    %51 = arith.subf %47, %50 : vector<2x28xf32>
    %52 = math.exp %51 : vector<2x28xf32>
    %cst_23 = arith.constant dense<0.000000e+00> : vector<2xf32>
    %53 = vector.multi_reduction <add>, %52, %cst_23 [1] : vector<2x28xf32> to vector<2xf32>
    %54 = vector.shape_cast %53 : vector<2xf32> to vector<2x1xf32>
    %55 = math.log %54 : vector<2x1xf32>
    %56 = vector.broadcast %55 : vector<2x1xf32> to vector<2x28xf32>
    %57 = arith.subf %51, %56 : vector<2x28xf32>
    %cst_24 = arith.constant dense<0xFF800000> : vector<2xf32>
    %58 = vector.multi_reduction <maximumf>, %57, %cst_24 [1] : vector<2x28xf32> to vector<2xf32>
    %59 = vector.shape_cast %58 : vector<2xf32> to vector<2x1xf32>
    %60 = vector.broadcast %59 : vector<2x1xf32> to vector<2x28xf32>
    %61 = arith.subf %57, %60 : vector<2x28xf32>
    %62 = math.exp %61 : vector<2x28xf32>
    %cst_25 = arith.constant dense<0.000000e+00> : vector<2xf32>
    %63 = vector.multi_reduction <add>, %62, %cst_25 [1] : vector<2x28xf32> to vector<2xf32>
    %64 = vector.shape_cast %63 : vector<2xf32> to vector<2x1xf32>
    %65 = math.log %64 : vector<2x1xf32>
    %66 = vector.broadcast %65 : vector<2x1xf32> to vector<2x28xf32>
    %67 = arith.subf %61, %66 : vector<2x28xf32>
    %c0_26 = arith.constant 0 : index
    %c0_27 = arith.constant 0 : index
    %68 = vector.load %arg9[%c0_26, %c0_27] : memref<2x28xf32, #tpu.memory_space<vmem>>, vector<2x28xf32>
    tpu.vector_store %arg9[%c0_26, %c0_27], %67 {strides = array<i32>} : memref<2x28xf32, #tpu.memory_space<vmem>>, vector<2x28xf32>,
    return
  }
  func.func @transform_0(%arg0: i32) -> (i32, i32) {
    %c0_i32 = arith.constant 0 : i32
    %c0_i32_0 = arith.constant 0 : i32
    return %arg0, %c0_i32 : i32, i32
  }
  func.func @transform_1(%arg0: i32) -> (i32, i32) {
    %c0_i32 = arith.constant 0 : i32
    %c0_i32_0 = arith.constant 0 : i32
    return %arg0, %c0_i32 : i32, i32
  }
  func.func @transform_2(%arg0: i32) -> (i32, i32) {
    %c0_i32 = arith.constant 0 : i32
    %c0_i32_0 = arith.constant 0 : i32
    return %arg0, %c0_i32 : i32, i32
  }
  func.func @transform_3(%arg0: i32) -> i32 {
    %c0_i32 = arith.constant 0 : i32
    %c0_i32_0 = arith.constant 0 : i32
    return %c0_i32 : i32
  }
  func.func @transform_4(%arg0: i32) -> (i32, i32) {
    %c0_i32 = arith.constant 0 : i32
    %c0_i32_0 = arith.constant 0 : i32
    %c0_i32_1 = arith.constant 0 : i32
    return %c0_i32, %c0_i32_0 : i32, i32
  }
  func.func @transform_5(%arg0: i32) -> (i32, i32) {
    %c0_i32 = arith.constant 0 : i32
    %c0_i32_0 = arith.constant 0 : i32
    %c0_i32_1 = arith.constant 0 : i32
    return %c0_i32, %c0_i32_0 : i32, i32
  }
  func.func @transform_6(%arg0: i32) -> (i32, i32) {
    %c0_i32 = arith.constant 0 : i32
    %c0_i32_0 = arith.constant 0 : i32
    %c0_i32_1 = arith.constant 0 : i32
    return %c0_i32, %c0_i32_0 : i32, i32
  }
  func.func @transform_7(%arg0: i32) -> (i32, i32) {
    %c0_i32 = arith.constant 0 : i32
    %c0_i32_0 = arith.constant 0 : i32
    %c0_i32_1 = arith.constant 0 : i32
    return %c0_i32, %c0_i32_0 : i32, i32
  }
  func.func @transform_8(%arg0: i32) -> (i32, i32) {
    %c0_i32 = arith.constant 0 : i32
    %c0_i32_0 = arith.constant 0 : i32
    return %arg0, %c0_i32 : i32, i32
  }
}

</mosaic_0001>

<bundles_post_ra>
// kernel: tpu_custom_call.1
= control target key start
LH: loop header
LB: loop body
LE: loop exit
PB: predicated region body
PF: predicated region fallthrough
CT: control target
= control target key end

     0   :  { %13 = vsyncpa [#allocation3], 0  ;;  %s705_s0 = inlined_call_operand.hbm [shape: bf16[16,32], index: 0, kind: input, shape index: {}]   ;;  %s706_s1 = inlined_call_operand.vmem [shape: s32[2,8], index: 1, kind: input, shape index: {}]   ;;  %s707_s2 = inlined_call_operand.vmem [shape: f32[2,28], index: 2, kind: input, shape index: {}]   ;;  %s708_s3 = inlined_call_operand.vmem [shape: f32[2], index: 3, kind: input, shape index: {}]   ;;  %s709_s4 = inlined_call_operand.hbm [shape: bf16[32,28], index: 4, kind: input, shape index: {}]   ;;  %s710_s5 = inlined_call_operand.vmem [shape: f32[1,28], index: 5, kind: input, shape index: {}]   ;;  %s711_s6 = inlined_call_operand.vmem [shape: f32[8,8], index: 6, kind: input, shape index: {}]   ;;  %s712_s7 = inlined_call_operand.vmem [shape: f32[1,8], index: 7, kind: input, shape index: {}]   ;;  %s713_s8 = inlined_call_operand.hbm [shape: f32[2,28], index: 8, kind: output, shape index: {}]  }
   0x1   :  { %14 = vsyncpa [#allocation5], 0 }
   0x2   :  { %15 = vsyncpa [#allocation8], 0 }
   0x3   :  { %16 = vsyncpa [#allocation4], 0  ;;  %s574_s27 = smov [#allocation2]   ;;  %s39_s9 = sshll.u32 %s708_s3, 4  ;;  %s40_s9 = int_to_ptr.vmem [resolvable:$true] %s39_s9 }
   0x4   :  { %s22_s28 = sshll.u32 %s574_s27, 4  ;;  %s488_s12 = scalar_lea.hbm %s705_s0, 128  ;;  %s23_s28 = int_to_ptr.vmem [resolvable:$true] %s22_s28 }
   0x5   :  { %p489_p0 = scmp.ne.s32.totalorder %s705_s0, %s488_s12  ;;  %p492_p1 = scmp.lt.u32.totalorder %s488_s12, %s705_s0 }
   0x7   :  { %p494_p2 = pnand %p492_p1, %p489_p0 }
   0x9   :  { %497 = shalt.err (!%p494_p2)
}
   0xa   :  { %s498_s17 = scalar_lea.vmem %s23_s28, 128  ;;  %p503_p4 = scmp.lt.s32.totalorder %s23_s28, %s23_s28 }
   0xb   :  { %p499_p3 = scmp.ne.s32.totalorder %s23_s28, %s498_s17  ;;  %p504_p5 = scmp.lt.s32.totalorder %s498_s17, %s498_s17 }
   0xd   :  { %p505_p6 = por %p504_p5, %p503_p4 }
   0xf   :  { %p506_p7 = pnand %p505_p6, %p499_p3 }
  0x11   :  { %509 = shalt.err (!%p506_p7)
}
  0x12   :  { %s575_s3 = smov 64   ;;  %s576_s18 = smov 4  }
  0x13   :  { %28 = dma.hbm_to_vmem [thread:$0]  %s705_s0, 128, %s23_s28, [#allocation3], %s575_s3, %s575_s3, %s576_s18  }
  0x14   :  { %s510_s21 = scalar_lea.vmem %s40_s9, 16  ;;  %p515_p9 = scmp.lt.s32.totalorder %s40_s9, %s40_s9 }
  0x15   :  { %p511_p8 = scmp.ne.s32.totalorder %s40_s9, %s510_s21  ;;  %p516_p10 = scmp.lt.s32.totalorder %s510_s21, %s510_s21 }
  0x17   :  { %p517_p11 = por %p516_p10, %p515_p9 }
  0x19   :  { %p518_p12 = pnand %p517_p11, %p511_p8 }
  0x1b   :  { %521 = shalt.err (!%p518_p12)
}
  0x1c   :  { %s577_s22 = smov [#allocation6]   ;;  %s578_s23 = smov [#allocation7]  }
  0x1d   :  { %42 = dma.vmem_to_smem %s40_s9, 16, %s577_s22, [#allocation5]  }
  0x1e   :  { %s48_s24 = sshll.u32 %s578_s23, 4  ;;  %s522_s27 = scalar_lea.hbm %s709_s4, 256  ;;  %s49_s24 = int_to_ptr.vmem [resolvable:$true] %s48_s24 }
  0x1f   :  { %p523_p13 = scmp.ne.s32.totalorder %s709_s4, %s522_s27  ;;  %p526_p0 = scmp.lt.u32.totalorder %s522_s27, %s709_s4 }
  0x21   :  { %p528_p1 = pnand %p526_p0, %p523_p13 }
  0x23   :  { %531 = shalt.err (!%p528_p1)
}
  0x24   :  { %s532_s10 = scalar_lea.vmem %s49_s24, 256  ;;  %p537_p3 = scmp.lt.s32.totalorder %s49_s24, %s49_s24 }
  0x25   :  { %p533_p2 = scmp.ne.s32.totalorder %s49_s24, %s532_s10  ;;  %p538_p4 = scmp.lt.s32.totalorder %s532_s10, %s532_s10 }
  0x27   :  { %p539_p5 = por %p538_p4, %p537_p3 }
  0x29   :  { %p540_p6 = pnand %p539_p5, %p533_p2 }
  0x2b   :  { %543 = shalt.err (!%p540_p6)
}
  0x2c   :  { %54 = dma.hbm_to_vmem [thread:$0]  %s709_s4, 256, %s49_s24, [#allocation8], %s575_s3, %s575_s3, %s576_s18  }
  0x2d   :  { %566 = dma.done.wait [#allocation3], 128  }
  0x2e   :  { %567 = vsyncadd [#allocation3], 4294967168 }
  0x2f   :  { %568 = dma.done.wait [#allocation5], 16  }
  0x30   :  { %569 = vsyncadd [#allocation5], 4294967280 }
  0x31   :  { %570 = dma.done.wait [#allocation8], 256  }
  0x32   :  { %571 = vsyncadd [#allocation8], 4294967040 }
  0x33   :  { %70 = sfence }
  0x34   :  { %v465_v0 = vld [vmem:[#allocation7] sm:$0xff]   ;;  %v579_v1 = vmov 0.0   ;;  %v466_v2 = vld [vmem:[#allocation7 + $0x8] sm:$0xff]   ;;  %vm580_vm0 = vmmov 0   ;;  %v224_v3 = vld [vmem:[%s711_s6] sm:$0xff]  ;;  %s217_s4 = sld [smem:[#allocation6]]  ;;  %v153_v11 = vlaneseq }
  0x35   :  { %442 = vmatprep.subr.bf16.mxu0 %v579_v1  ;;  %450 = vmatprep.subr.mxu1 %v579_v1  ;;  %s434_s14 = sld [smem:[#allocation6 + $0x1]]  ;;  %v219_v4 = vld [vmem:[%s706_s1] sm:$0x3]  ;;  %vm102_vm1 = vcmask 261120   ;;  %vm232_vm3 = vcmask 64512   ;;  %v582_v16 = vmov 0  }
  0x36   :  { %443 = vmatpush3.bf16.msra.mxu0 %v465_v0  ;;  %446 = vmatprep.mubr.msk.bf16.mxu0 %vm580_vm0, %v579_v1  ;;  %v467_v5 = vld [vmem:[#allocation2] sm:$0xff]   ;;  %vm220_vm2 = vcmp.ne.s32.totalorder %v219_v4, 0  ;;  %v581_v9 = vmov 1966171168   ;;  %v154_v14 = vshrl.u32 %v153_v11, 7  ;;  %vm188_vm8 = vcmask 228352  }
  0x37   :  { %444 = vmatprep.subr.bf16.mxu0 %v579_v1  ;;  %452 = vmatprep.mubr.msk.f32.mxu1 %vm580_vm0, %v579_v1  ;;  %v151_v10 = vunpack.c.l.s4 %v581_v9  ;;  %v147_v12 = vld [vmem:[%s707_s2] sm:$0x3]  ;;  %vm339_vm10 = vcmask 1041409   ;;  %vm342_vm11 = vcmask 222208  }
  0x38   :  { %451 = vmatpush3.msra.mxu1 %v224_v3  ;;  %vm148_vm4 = vcmp.ne.f32.partialorder %v147_v12, 0.0  ;;  %v178_v22 = vsub.s32 0, %v154_v14  ;;  %v429_v26 = vld [vmem:[%s710_s5] ss:$0 sm:$0xff]  ;;  %v316_v54 = vsub.s32 1, %v154_v14 }
  0x39   :  { %v152_v13 = vunpack.c.0.s8 %v151_v10  ;;  %v149_v17 = vsel %vm148_vm4, 1, %v582_v16  ;;  %v435_v38 = vld [vmem:[%s712_s7] ss:$0 sm:$0xff]  ;;  %s583_s7 = smov [#allocation9]  }
  0x3a   :  { %445 = vmatpush3.bf16.msra.mxu0 %v466_v2  ;;  %v222_v7 = vstv %s217_s4  ;;  %s418_s18 = sshll.u32 %s583_s7, 4  ;;  %s419_s18 = int_to_ptr.vmem [resolvable:$true] %s418_s18 }
  0x3b   :  { %v221_v6 = vstv %s434_s14  ;;  %v155_v15 = vsub.s32 %v152_v13, %v154_v14  ;;  %s544_s19 = scalar_lea.vmem %s419_s18, 32  ;;  %p549_p8 = scmp.lt.s32.totalorder %s419_s18, %s419_s18 }
  0x3c   :  { %v223_v8 = vsel %vm220_vm2, %v221_v6, %v222_v7  ;;  %p545_p7 = scmp.ne.s32.totalorder %s419_s18, %s544_s19  ;;  %p550_p9 = scmp.lt.s32.totalorder %s544_s19, %s544_s19 }
  0x3d   :  { %447 = vmatmul.mubr.msk.bf16.vlgmr.msra.gmra.mrb[0].mxu0 %vm102_vm1, %v467_v5  ;;  %453 = vmatmul.mubr.msk.f32.vlgmr.msra.gmra.mrb[0].mxu1 %vm232_vm3, %v223_v8  ;;  %v156_v18 = vrot.slane %v149_v17, %v155_v15 }
  0x3e   :  { %p551_p10 = por %p550_p9, %p549_p8 }
  0x3f   :  { %v157_v19 = vcombine.high %v156_v18, %v156_v18  ;;  %v164_v20 = vrot.slane %v156_v18, %v155_v15 }
  0x40   :  { %p552_p11 = pnand %p551_p10, %p545_p7 }
  0x41   :  { %v171_v21 = vrot.slane %v157_v19, %v155_v15  ;;  %vm172_vm5 = vcmp.ne.s32.totalorder %v164_v20, 0 }
  0x42   :  { %v174_v23 = vsel %vm172_vm5, 1, %v582_v16 }
  0x43   :  { %vm173_vm6 = vcmp.ne.s32.totalorder %v171_v21, 0  ;;  %v179_v25 = vrot.slane %v174_v23, %v178_v22 }
  0x44   :  { %v175_v24 = vsel %vm173_vm6, 1, %v582_v16 }
  0x45   :  { %v183_v27 = vrot.slane %v175_v24, %v178_v22  ;;  %vm184_vm7 = vcmp.eq.s32.totalorder %v179_v25, 1 }
  0x47   :  { %vm185_vm9 = vcmp.eq.s32.totalorder %v183_v27, 1 }
 0x110   :  { %v140_v28 = vpop.f32.mrb[0].mxu0  ;;  %v302_v39 = vpop.f32.mrb[0].mxu1 }
 0x111   :  { %v141_v29 = vadd.f32 %v429_v26, %v140_v28  ;;  %v448_v30 = vpop.f32.mrb[1].mxu0  ;;  %v303_v40 = vadd.f32 %v435_v38, %v302_v39  ;;  %v454_v41 = vpop.f32.mrb[1].mxu1 }
 0x112   :  { %v143_v31 = vpop.f32.mrb[2].mxu0 }
 0x113   :  { %v144_v32 = vadd.f32 %v429_v26, %v143_v31  ;;  %v449_v33 = vpop.f32.mrb[3].mxu0  ;;  %v186_v34 = vsel %vm184_vm7, %v141_v29, -1e+09  ;;  %v306_v42 = vmax.f32 %v303_v40, 0.0 }
 0x114   :  { %v189_v35 = vsel %vm188_vm8, %v186_v34, -inf }
 0x115   :  { %190 = vmax.xlane.f32.xlu0 %v189_v35  ;;  %v187_v36 = vsel %vm185_vm9, %v144_v32, -1e+09  ;;  %v310_v43 = vrot.slane %v306_v42, %v178_v22  ;;  %v317_v55 = vrot.slane %v306_v42, %v316_v54 }
 0x116   :  { %v192_v37 = vsel %vm188_vm8, %v187_v36, -inf }
 0x119   :  { %193 = vmax.xlane.f32.xlu0 %v192_v37 }
 0x12f   :  { %312 = vbcast.lane.b32.xlu0 %v310_v43, 256 }
 0x1a2   :  { %v191_v44 = vpop.xlane.xlu0 %190 }
 0x1a3   :  { %v195_v45 = vsub.f32 %v186_v34, %v191_v44 }
 0x1a5   :  { %v197_v46 = vmul.f32 1.442695, %v195_v45 }
 0x1a6   :  { %v194_v47 = vpop.xlane.xlu0 %193 }
 0x1a7   :  { %468 = vpow2.f32 %v197_v46  ;;  %v196_v48 = vsub.f32 %v187_v36, %v194_v47 }
 0x1a9   :  { %v199_v49 = vmul.f32 1.442695, %v196_v48 }
 0x1aa   :  { %v313_v0 = vpop.permute.xlu0 %312 }
 0x1ab   :  { %470 = vpow2.f32 %v199_v49 }
 0x1b1   :  { %v469_v50 = vpop.eup %468 }
 0x1b2   :  { %v201_v51 = vsel %vm188_vm8, %v469_v50, 0.0 }
 0x1b3   :  { %202 = vadd.xlane.f32.xlu1 %v201_v51 }
 0x1b5   :  { %v471_v52 = vpop.eup %470 }
 0x1b6   :  { %v204_v53 = vsel %vm188_vm8, %v471_v52, 0.0 }
 0x1b7   :  { %205 = vadd.xlane.f32.xlu1 %v204_v53 }
 0x1c8   :  { %319 = vbcast.lane.b32.xlu1 %v317_v55, 256 }
 0x240   :  { %v203_v56 = vpop.xlane.xlu1 %202 }
 0x241   :  { %472 = vrcp.f32 %v203_v56 }
 0x244   :  { %v206_v57 = vpop.xlane.xlu1 %205 }
 0x245   :  { %474 = vrcp.f32 %v206_v57 }
 0x248   :  { %v320_v5 = vpop.permute.xlu1 %319 }
 0x24b   :  { %v473_v58 = vpop.eup %472 }
 0x24c   :  { %v209_v59 = vmul.f32 %v473_v58, %v203_v56 }
 0x24e   :  { %v211_v60 = vsub.f32 2.0, %v209_v59 }
 0x24f   :  { %v475_v61 = vpop.eup %474 }
 0x250   :  { %v213_v62 = vmul.f32 %v473_v58, %v211_v60  ;;  %v210_v63 = vmul.f32 %v475_v61, %v206_v57 }
 0x252   :  { %v212_v1 = vsub.f32 2.0, %v210_v63  ;;  %v215_v2 = vmul.f32 %v469_v50, %v213_v62 }
 0x254   :  { %v214_v3 = vmul.f32 %v475_v61, %v212_v1  ;;  %v321_v4 = vmul.f32 %v313_v0, %v215_v2 }
 0x256   :  { %v323_v6 = vsel %vm188_vm8, %v321_v4, 0.0  ;;  %v216_v7 = vmul.f32 %v471_v52, %v214_v3 }
 0x257   :  { %v324_v8 = vrot.slane %v323_v6, 4 }
 0x258   :  { %v322_v9 = vmul.f32 %v320_v5, %v216_v7 }
 0x259   :  { %v325_v10 = vadd.f32 %v324_v8, %v323_v6 }
 0x25a   :  { %v330_v11 = vsel %vm188_vm8, %v322_v9, 0.0 }
 0x25b   :  { %v326_v12 = vrot.slane %v325_v10, 2  ;;  %v331_v13 = vrot.slane %v330_v11, 4 }
 0x25d   :  { %v327_v14 = vadd.f32 %v326_v12, %v325_v10  ;;  %v332_v15 = vadd.f32 %v331_v13, %v330_v11 }
 0x25f   :  { %v333_v16 = vrot.slane %v332_v15, 2  ;;  %v328_v17 = vrot.slane %v327_v14, 1 }
 0x261   :  { %v334_v18 = vadd.f32 %v333_v16, %v332_v15  ;;  %v329_v20 = vadd.f32 %v328_v17, %v327_v14 }
 0x263   :  { %v335_v19 = vrot.slane %v334_v18, 1 }
 0x265   :  { %v336_v21 = vadd.f32 %v335_v19, %v334_v18 }
 0x267   :  { %v340_v22 = vsel %vm339_vm10, %v336_v21, %v329_v20 }
 0x268   :  { %v343_v23 = vsel %vm342_vm11, %v340_v22, -inf }
 0x269   :  { %344 = vmax.xlane.f32.xlu1 %v343_v23 }
 0x2f6   :  { %v345_v24 = vpop.xlane.xlu1 %344 }
 0x2f7   :  { %v347_v25 = vrot.slane %v345_v24, 1  ;;  %v350_v26 = vsub.f32 %v329_v20, %v345_v24 }
 0x2f9   :  { %v351_v27 = vsub.f32 %v336_v21, %v347_v25  ;;  %v352_v28 = vmul.f32 1.442695, %v350_v26 }
 0x2fb   :  { %v354_v29 = vmul.f32 1.442695, %v351_v27 }
 0x2fd   :  { %476 = vpow2.f32 %v354_v29 }
 0x2fe   :  { %478 = vpow2.f32 %v352_v28 }
 0x307   :  { %v477_v30 = vpop.eup %476 }
 0x308   :  { %v358_v31 = vrot.slane %v477_v30, 7  ;;  %v479_v32 = vpop.eup %478 }
 0x30a   :  { %v359_v33 = vsel %vm339_vm10, %v358_v31, %v479_v32 }
 0x30b   :  { %v361_v34 = vsel %vm342_vm11, %v359_v33, 0.0 }
 0x30c   :  { %362 = vadd.xlane.f32.xlu0 %v361_v34 }
 0x399   :  { %v363_v35 = vpop.xlane.xlu0 %362 }
 0x39a   :  { %480 = vlog2.f32 %v363_v35 }
 0x3a4   :  { %v481_v36 = vpop.eup %480 }
 0x3a5   :  { %v365_v37 = vmul.f32 0.6931472, %v481_v36 }
 0x3a7   :  { %v367_v38 = vrot.slane %v365_v37, 1  ;;  %v370_v40 = vsub.f32 %v350_v26, %v365_v37 }
 0x3a9   :  { %v371_v39 = vsub.f32 %v351_v27, %v367_v38 }
 0x3ab   :  { %v374_v41 = vrot.slane %v371_v39, 7 }
 0x3ad   :  { %v375_v42 = vsel %vm339_vm10, %v374_v41, %v370_v40 }
 0x3ae   :  { %v377_v43 = vsel %vm342_vm11, %v375_v42, -inf }
 0x3af   :  { %378 = vmax.xlane.f32.xlu0 %v377_v43 }
 0x43c   :  { %v379_v44 = vpop.xlane.xlu0 %378 }
 0x43d   :  { %v381_v45 = vrot.slane %v379_v44, 1  ;;  %v384_v46 = vsub.f32 %v370_v40, %v379_v44 }
 0x43f   :  { %v385_v47 = vsub.f32 %v371_v39, %v381_v45  ;;  %v386_v48 = vmul.f32 1.442695, %v384_v46 }
 0x441   :  { %v388_v49 = vmul.f32 1.442695, %v385_v47 }
 0x443   :  { %482 = vpow2.f32 %v388_v49 }
 0x444   :  { %484 = vpow2.f32 %v386_v48 }
 0x44d   :  { %v483_v50 = vpop.eup %482 }
 0x44e   :  { %v392_v51 = vrot.slane %v483_v50, 7  ;;  %v485_v52 = vpop.eup %484 }
 0x450   :  { %v393_v53 = vsel %vm339_vm10, %v392_v51, %v485_v52 }
 0x451   :  { %v395_v54 = vsel %vm342_vm11, %v393_v53, 0.0 }
 0x452   :  { %396 = vadd.xlane.f32.xlu1 %v395_v54 }
 0x4df   :  { %v397_v55 = vpop.xlane.xlu1 %396 }
 0x4e0   :  { %486 = vlog2.f32 %v397_v55 }
 0x4ea   :  { %v487_v56 = vpop.eup %486 }
 0x4eb   :  { %v399_v57 = vmul.f32 0.6931472, %v487_v56 }
 0x4ed   :  { %v401_v58 = vrot.slane %v399_v57, 1  ;;  %v404_v60 = vsub.f32 %v384_v46, %v399_v57 }
 0x4ef   :  { %v405_v59 = vsub.f32 %v385_v47, %v401_v58 }
 0x4f1   :  { %v408_v61 = vrot.slane %v405_v59, 7 }
 0x4f3   :  { %v409_v62 = vsel %vm339_vm10, %v408_v61, %v404_v60 }
 0x4f4   :  { %411 = vst.msk [vmem:[#allocation9] sm:$0x3] %vm342_vm11, %v409_v62 }
 0x4f5   :  { %555 = shalt.err (!%p552_p11)
}
 0x4f6   :  { %s556_s22 = scalar_lea.hbm %s713_s8, 32 }
 0x4f7   :  { %p557_p12 = scmp.ne.s32.totalorder %s713_s8, %s556_s22  ;;  %p560_p13 = scmp.lt.u32.totalorder %s556_s22, %s713_s8 }
 0x4f9   :  { %p562_p0 = pnand %p560_p13, %p557_p12 }
 0x4fb   :  { %565 = shalt.err (!%p562_p0)
}
 0x4fc   :  { %421 = dma.vmem_to_hbm [thread:$0]  %s419_s18, 32, %s713_s8, [#allocation4]  }
 0x4fd   :  { %572 = dma.done.wait [#allocation4], 32  }
 0x4fe   :  { %573 = vsyncadd [#allocation4], 4294967264 }
 0x4ff   :  { %425 = vsyncpa [#allocation3], 1 }
 0x500   :  { %426 = vsyncpa [#allocation8], 1 }
 0x501   :  { %427 = vsyncpa [#allocation4], 1 }
 0x502   :  { %428 = vsyncpa [#allocation5], 1 }

// kernel: tpu_custom_call.1
= control target key start
LH: loop header
LB: loop body
LE: loop exit
PB: predicated region body
PF: predicated region fallthrough
CT: control target
= control target key end

     0   :  { %13 = vsyncpa [#allocation3], 0  ;;  %s705_s0 = inlined_call_operand.hbm [shape: bf16[16,32], index: 0, kind: input, shape index: {}]   ;;  %s706_s1 = inlined_call_operand.vmem [shape: s32[2,8], index: 1, kind: input, shape index: {}]   ;;  %s707_s2 = inlined_call_operand.vmem [shape: f32[2,28], index: 2, kind: input, shape index: {}]   ;;  %s708_s3 = inlined_call_operand.vmem [shape: f32[2], index: 3, kind: input, shape index: {}]   ;;  %s709_s4 = inlined_call_operand.hbm [shape: bf16[32,28], index: 4, kind: input, shape index: {}]   ;;  %s710_s5 = inlined_call_operand.vmem [shape: f32[1,28], index: 5, kind: input, shape index: {}]   ;;  %s711_s6 = inlined_call_operand.vmem [shape: f32[8,8], index: 6, kind: input, shape index: {}]   ;;  %s712_s7 = inlined_call_operand.vmem [shape: f32[1,8], index: 7, kind: input, shape index: {}]   ;;  %s713_s8 = inlined_call_operand.hbm [shape: f32[2,28], index: 8, kind: output, shape index: {}]  }
   0x1   :  { %14 = vsyncpa [#allocation5], 0 }
   0x2   :  { %15 = vsyncpa [#allocation8], 0 }
   0x3   :  { %16 = vsyncpa [#allocation4], 0  ;;  %s574_s27 = smov [#allocation2]   ;;  %s39_s9 = sshll.u32 %s708_s3, 4  ;;  %s40_s9 = int_to_ptr.vmem [resolvable:$true] %s39_s9 }
   0x4   :  { %s22_s28 = sshll.u32 %s574_s27, 4  ;;  %s488_s12 = scalar_lea.hbm %s705_s0, 128  ;;  %s23_s28 = int_to_ptr.vmem [resolvable:$true] %s22_s28 }
   0x5   :  { %p489_p0 = scmp.ne.s32.totalorder %s705_s0, %s488_s12  ;;  %p492_p1 = scmp.lt.u32.totalorder %s488_s12, %s705_s0 }
   0x7   :  { %p494_p2 = pnand %p492_p1, %p489_p0 }
   0x9   :  { %497 = shalt.err (!%p494_p2)
}
   0xa   :  { %s498_s17 = scalar_lea.vmem %s23_s28, 128  ;;  %p503_p4 = scmp.lt.s32.totalorder %s23_s28, %s23_s28 }
   0xb   :  { %p499_p3 = scmp.ne.s32.totalorder %s23_s28, %s498_s17  ;;  %p504_p5 = scmp.lt.s32.totalorder %s498_s17, %s498_s17 }
   0xd   :  { %p505_p6 = por %p504_p5, %p503_p4 }
   0xf   :  { %p506_p7 = pnand %p505_p6, %p499_p3 }
  0x11   :  { %509 = shalt.err (!%p506_p7)
}
  0x12   :  { %s575_s3 = smov 64   ;;  %s576_s18 = smov 4  }
  0x13   :  { %28 = dma.hbm_to_vmem [thread:$0]  %s705_s0, 128, %s23_s28, [#allocation3], %s575_s3, %s575_s3, %s576_s18  }
  0x14   :  { %s510_s21 = scalar_lea.vmem %s40_s9, 16  ;;  %p515_p9 = scmp.lt.s32.totalorder %s40_s9, %s40_s9 }
  0x15   :  { %p511_p8 = scmp.ne.s32.totalorder %s40_s9, %s510_s21  ;;  %p516_p10 = scmp.lt.s32.totalorder %s510_s21, %s510_s21 }
  0x17   :  { %p517_p11 = por %p516_p10, %p515_p9 }
  0x19   :  { %p518_p12 = pnand %p517_p11, %p511_p8 }
  0x1b   :  { %521 = shalt.err (!%p518_p12)
}
  0x1c   :  { %s577_s22 = smov [#allocation6]   ;;  %s578_s23 = smov [#allocation7]  }
  0x1d   :  { %42 = dma.vmem_to_smem %s40_s9, 16, %s577_s22, [#allocation5]  }
  0x1e   :  { %s48_s24 = sshll.u32 %s578_s23, 4  ;;  %s522_s27 = scalar_lea.hbm %s709_s4, 256  ;;  %s49_s24 = int_to_ptr.vmem [resolvable:$true] %s48_s24 }
  0x1f   :  { %p523_p13 = scmp.ne.s32.totalorder %s709_s4, %s522_s27  ;;  %p526_p0 = scmp.lt.u32.totalorder %s522_s27, %s709_s4 }
  0x21   :  { %p528_p1 = pnand %p526_p0, %p523_p13 }
  0x23   :  { %531 = shalt.err (!%p528_p1)
}
  0x24   :  { %s532_s10 = scalar_lea.vmem %s49_s24, 256  ;;  %p537_p3 = scmp.lt.s32.totalorder %s49_s24, %s49_s24 }
  0x25   :  { %p533_p2 = scmp.ne.s32.totalorder %s49_s24, %s532_s10  ;;  %p538_p4 = scmp.lt.s32.totalorder %s532_s10, %s532_s10 }
  0x27   :  { %p539_p5 = por %p538_p4, %p537_p3 }
  0x29   :  { %p540_p6 = pnand %p539_p5, %p533_p2 }
  0x2b   :  { %543 = shalt.err (!%p540_p6)
}
  0x2c   :  { %54 = dma.hbm_to_vmem [thread:$0]  %s709_s4, 256, %s49_s24, [#allocation8], %s575_s3, %s575_s3, %s576_s18  }
  0x2d   :  { %566 = dma.done.wait [#allocation3], 128  }
  0x2e   :  { %567 = vsyncadd [#allocation3], 4294967168 }
  0x2f   :  { %568 = dma.done.wait [#allocation5], 16  }
  0x30   :  { %569 = vsyncadd [#allocation5], 4294967280 }
  0x31   :  { %570 = dma.done.wait [#allocation8], 256  }
  0x32   :  { %571 = vsyncadd [#allocation8], 4294967040 }
  0x33   :  { %70 = sfence }
  0x34   :  { %v465_v0 = vld [vmem:[#allocation7] sm:$0xff]   ;;  %v579_v1 = vmov 0.0   ;;  %v466_v2 = vld [vmem:[#allocation7 + $0x8] sm:$0xff]   ;;  %vm580_vm0 = vmmov 0   ;;  %v224_v3 = vld [vmem:[%s711_s6] sm:$0xff]  ;;  %s217_s4 = sld [smem:[#allocation6]]  ;;  %v153_v11 = vlaneseq }
  0x35   :  { %442 = vmatprep.subr.bf16.mxu0 %v579_v1  ;;  %450 = vmatprep.subr.mxu1 %v579_v1  ;;  %s434_s14 = sld [smem:[#allocation6 + $0x1]]  ;;  %v219_v4 = vld [vmem:[%s706_s1] sm:$0x3]  ;;  %vm102_vm1 = vcmask 261120   ;;  %vm232_vm3 = vcmask 64512   ;;  %v582_v16 = vmov 0  }
  0x36   :  { %443 = vmatpush3.bf16.msra.mxu0 %v465_v0  ;;  %446 = vmatprep.mubr.msk.bf16.mxu0 %vm580_vm0, %v579_v1  ;;  %v467_v5 = vld [vmem:[#allocation2] sm:$0xff]   ;;  %vm220_vm2 = vcmp.ne.s32.totalorder %v219_v4, 0  ;;  %v581_v9 = vmov 1966171168   ;;  %v154_v14 = vshrl.u32 %v153_v11, 7  ;;  %vm188_vm8 = vcmask 228352  }
  0x37   :  { %444 = vmatprep.subr.bf16.mxu0 %v579_v1  ;;  %452 = vmatprep.mubr.msk.f32.mxu1 %vm580_vm0, %v579_v1  ;;  %v151_v10 = vunpack.c.l.s4 %v581_v9  ;;  %v147_v12 = vld [vmem:[%s707_s2] sm:$0x3]  ;;  %vm339_vm10 = vcmask 1041409   ;;  %vm342_vm11 = vcmask 222208  }
  0x38   :  { %451 = vmatpush3.msra.mxu1 %v224_v3  ;;  %vm148_vm4 = vcmp.ne.f32.partialorder %v147_v12, 0.0  ;;  %v178_v22 = vsub.s32 0, %v154_v14  ;;  %v429_v26 = vld [vmem:[%s710_s5] ss:$0 sm:$0xff]  ;;  %v316_v54 = vsub.s32 1, %v154_v14 }
  0x39   :  { %v152_v13 = vunpack.c.0.s8 %v151_v10  ;;  %v149_v17 = vsel %vm148_vm4, 1, %v582_v16  ;;  %v435_v38 = vld [vmem:[%s712_s7] ss:$0 sm:$0xff]  ;;  %s583_s7 = smov [#allocation9]  }
  0x3a   :  { %445 = vmatpush3.bf16.msra.mxu0 %v466_v2  ;;  %v222_v7 = vstv %s217_s4  ;;  %s418_s18 = sshll.u32 %s583_s7, 4  ;;  %s419_s18 = int_to_ptr.vmem [resolvable:$true] %s418_s18 }
  0x3b   :  { %v221_v6 = vstv %s434_s14  ;;  %v155_v15 = vsub.s32 %v152_v13, %v154_v14  ;;  %s544_s19 = scalar_lea.vmem %s419_s18, 32  ;;  %p549_p8 = scmp.lt.s32.totalorder %s419_s18, %s419_s18 }
  0x3c   :  { %v223_v8 = vsel %vm220_vm2, %v221_v6, %v222_v7  ;;  %p545_p7 = scmp.ne.s32.totalorder %s419_s18, %s544_s19  ;;  %p550_p9 = scmp.lt.s32.totalorder %s544_s19, %s544_s19 }
  0x3d   :  { %447 = vmatmul.mubr.msk.bf16.vlgmr.msra.gmra.mrb[0].mxu0 %vm102_vm1, %v467_v5  ;;  %453 = vmatmul.mubr.msk.f32.vlgmr.msra.gmra.mrb[0].mxu1 %vm232_vm3, %v223_v8  ;;  %v156_v18 = vrot.slane %v149_v17, %v155_v15 }
  0x3e   :  { %p551_p10 = por %p550_p9, %p549_p8 }
  0x3f   :  { %v157_v19 = vcombine.high %v156_v18, %v156_v18  ;;  %v164_v20 = vrot.slane %v156_v18, %v155_v15 }
  0x40   :  { %p552_p11 = pnand %p551_p10, %p545_p7 }
  0x41   :  { %v171_v21 = vrot.slane %v157_v19, %v155_v15  ;;  %vm172_vm5 = vcmp.ne.s32.totalorder %v164_v20, 0 }
  0x42   :  { %v174_v23 = vsel %vm172_vm5, 1, %v582_v16 }
  0x43   :  { %vm173_vm6 = vcmp.ne.s32.totalorder %v171_v21, 0  ;;  %v179_v25 = vrot.slane %v174_v23, %v178_v22 }
  0x44   :  { %v175_v24 = vsel %vm173_vm6, 1, %v582_v16 }
  0x45   :  { %v183_v27 = vrot.slane %v175_v24, %v178_v22  ;;  %vm184_vm7 = vcmp.eq.s32.totalorder %v179_v25, 1 }
  0x47   :  { %vm185_vm9 = vcmp.eq.s32.totalorder %v183_v27, 1 }
 0x110   :  { %v140_v28 = vpop.f32.mrb[0].mxu0  ;;  %v302_v39 = vpop.f32.mrb[0].mxu1 }
 0x111   :  { %v141_v29 = vadd.f32 %v429_v26, %v140_v28  ;;  %v448_v30 = vpop.f32.mrb[1].mxu0  ;;  %v303_v40 = vadd.f32 %v435_v38, %v302_v39  ;;  %v454_v41 = vpop.f32.mrb[1].mxu1 }
 0x112   :  { %v143_v31 = vpop.f32.mrb[2].mxu0 }
 0x113   :  { %v144_v32 = vadd.f32 %v429_v26, %v143_v31  ;;  %v449_v33 = vpop.f32.mrb[3].mxu0  ;;  %v186_v34 = vsel %vm184_vm7, %v141_v29, -1e+09  ;;  %v306_v42 = vmax.f32 %v303_v40, 0.0 }
 0x114   :  { %v189_v35 = vsel %vm188_vm8, %v186_v34, -inf }
 0x115   :  { %190 = vmax.xlane.f32.xlu0 %v189_v35  ;;  %v187_v36 = vsel %vm185_vm9, %v144_v32, -1e+09  ;;  %v310_v43 = vrot.slane %v306_v42, %v178_v22  ;;  %v317_v55 = vrot.slane %v306_v42, %v316_v54 }
 0x116   :  { %v192_v37 = vsel %vm188_vm8, %v187_v36, -inf }
 0x119   :  { %193 = vmax.xlane.f32.xlu0 %v192_v37 }
 0x12f   :  { %312 = vbcast.lane.b32.xlu0 %v310_v43, 256 }
 0x1a2   :  { %v191_v44 = vpop.xlane.xlu0 %190 }
 0x1a3   :  { %v195_v45 = vsub.f32 %v186_v34, %v191_v44 }
 0x1a5   :  { %v197_v46 = vmul.f32 1.442695, %v195_v45 }
 0x1a6   :  { %v194_v47 = vpop.xlane.xlu0 %193 }
 0x1a7   :  { %468 = vpow2.f32 %v197_v46  ;;  %v196_v48 = vsub.f32 %v187_v36, %v194_v47 }
 0x1a9   :  { %v199_v49 = vmul.f32 1.442695, %v196_v48 }
 0x1aa   :  { %v313_v0 = vpop.permute.xlu0 %312 }
 0x1ab   :  { %470 = vpow2.f32 %v199_v49 }
 0x1b1   :  { %v469_v50 = vpop.eup %468 }
 0x1b2   :  { %v201_v51 = vsel %vm188_vm8, %v469_v50, 0.0 }
 0x1b3   :  { %202 = vadd.xlane.f32.xlu1 %v201_v51 }
 0x1b5   :  { %v471_v52 = vpop.eup %470 }
 0x1b6   :  { %v204_v53 = vsel %vm188_vm8, %v471_v52, 0.0 }
 0x1b7   :  { %205 = vadd.xlane.f32.xlu1 %v204_v53 }
 0x1c8   :  { %319 = vbcast.lane.b32.xlu1 %v317_v55, 256 }
 0x240   :  { %v203_v56 = vpop.xlane.xlu1 %202 }
 0x241   :  { %472 = vrcp.f32 %v203_v56 }
 0x244   :  { %v206_v57 = vpop.xlane.xlu1 %205 }
 0x245   :  { %474 = vrcp.f32 %v206_v57 }
 0x248   :  { %v320_v5 = vpop.permute.xlu1 %319 }
 0x24b   :  { %v473_v58 = vpop.eup %472 }
 0x24c   :  { %v209_v59 = vmul.f32 %v473_v58, %v203_v56 }
 0x24e   :  { %v211_v60 = vsub.f32 2.0, %v209_v59 }
 0x24f   :  { %v475_v61 = vpop.eup %474 }
 0x250   :  { %v213_v62 = vmul.f32 %v473_v58, %v211_v60  ;;  %v210_v63 = vmul.f32 %v475_v61, %v206_v57 }
 0x252   :  { %v212_v1 = vsub.f32 2.0, %v210_v63  ;;  %v215_v2 = vmul.f32 %v469_v50, %v213_v62 }
 0x254   :  { %v214_v3 = vmul.f32 %v475_v61, %v212_v1  ;;  %v321_v4 = vmul.f32 %v313_v0, %v215_v2 }
 0x256   :  { %v323_v6 = vsel %vm188_vm8, %v321_v4, 0.0  ;;  %v216_v7 = vmul.f32 %v471_v52, %v214_v3 }
 0x257   :  { %v324_v8 = vrot.slane %v323_v6, 4 }
 0x258   :  { %v322_v9 = vmul.f32 %v320_v5, %v216_v7 }
 0x259   :  { %v325_v10 = vadd.f32 %v324_v8, %v323_v6 }
 0x25a   :  { %v330_v11 = vsel %vm188_vm8, %v322_v9, 0.0 }
 0x25b   :  { %v326_v12 = vrot.slane %v325_v10, 2  ;;  %v331_v13 = vrot.slane %v330_v11, 4 }
 0x25d   :  { %v327_v14 = vadd.f32 %v326_v12, %v325_v10  ;;  %v332_v15 = vadd.f32 %v331_v13, %v330_v11 }
 0x25f   :  { %v333_v16 = vrot.slane %v332_v15, 2  ;;  %v328_v17 = vrot.slane %v327_v14, 1 }
 0x261   :  { %v334_v18 = vadd.f32 %v333_v16, %v332_v15  ;;  %v329_v20 = vadd.f32 %v328_v17, %v327_v14 }
 0x263   :  { %v335_v19 = vrot.slane %v334_v18, 1 }
 0x265   :  { %v336_v21 = vadd.f32 %v335_v19, %v334_v18 }
 0x267   :  { %v340_v22 = vsel %vm339_vm10, %v336_v21, %v329_v20 }
 0x268   :  { %v343_v23 = vsel %vm342_vm11, %v340_v22, -inf }
 0x269   :  { %344 = vmax.xlane.f32.xlu1 %v343_v23 }
 0x2f6   :  { %v345_v24 = vpop.xlane.xlu1 %344 }
 0x2f7   :  { %v347_v25 = vrot.slane %v345_v24, 1  ;;  %v350_v26 = vsub.f32 %v329_v20, %v345_v24 }
 0x2f9   :  { %v351_v27 = vsub.f32 %v336_v21, %v347_v25  ;;  %v352_v28 = vmul.f32 1.442695, %v350_v26 }
 0x2fb   :  { %v354_v29 = vmul.f32 1.442695, %v351_v27 }
 0x2fd   :  { %476 = vpow2.f32 %v354_v29 }
 0x2fe   :  { %478 = vpow2.f32 %v352_v28 }
 0x307   :  { %v477_v30 = vpop.eup %476 }
 0x308   :  { %v358_v31 = vrot.slane %v477_v30, 7  ;;  %v479_v32 = vpop.eup %478 }
 0x30a   :  { %v359_v33 = vsel %vm339_vm10, %v358_v31, %v479_v32 }
 0x30b   :  { %v361_v34 = vsel %vm342_vm11, %v359_v33, 0.0 }
 0x30c   :  { %362 = vadd.xlane.f32.xlu0 %v361_v34 }
 0x399   :  { %v363_v35 = vpop.xlane.xlu0 %362 }
 0x39a   :  { %480 = vlog2.f32 %v363_v35 }
 0x3a4   :  { %v481_v36 = vpop.eup %480 }
 0x3a5   :  { %v365_v37 = vmul.f32 0.6931472, %v481_v36 }
 0x3a7   :  { %v367_v38 = vrot.slane %v365_v37, 1  ;;  %v370_v40 = vsub.f32 %v350_v26, %v365_v37 }
 0x3a9   :  { %v371_v39 = vsub.f32 %v351_v27, %v367_v38 }
 0x3ab   :  { %v374_v41 = vrot.slane %v371_v39, 7 }
 0x3ad   :  { %v375_v42 = vsel %vm339_vm10, %v374_v41, %v370_v40 }
 0x3ae   :  { %v377_v43 = vsel %vm342_vm11, %v375_v42, -inf }
 0x3af   :  { %378 = vmax.xlane.f32.xlu0 %v377_v43 }
 0x43c   :  { %v379_v44 = vpop.xlane.xlu0 %378 }
 0x43d   :  { %v381_v45 = vrot.slane %v379_v44, 1  ;;  %v384_v46 = vsub.f32 %v370_v40, %v379_v44 }
 0x43f   :  { %v385_v47 = vsub.f32 %v371_v39, %v381_v45  ;;  %v386_v48 = vmul.f32 1.442695, %v384_v46 }
 0x441   :  { %v388_v49 = vmul.f32 1.442695, %v385_v47 }
 0x443   :  { %482 = vpow2.f32 %v388_v49 }
 0x444   :  { %484 = vpow2.f32 %v386_v48 }
 0x44d   :  { %v483_v50 = vpop.eup %482 }
 0x44e   :  { %v392_v51 = vrot.slane %v483_v50, 7  ;;  %v485_v52 = vpop.eup %484 }
 0x450   :  { %v393_v53 = vsel %vm339_vm10, %v392_v51, %v485_v52 }
 0x451   :  { %v395_v54 = vsel %vm342_vm11, %v393_v53, 0.0 }
 0x452   :  { %396 = vadd.xlane.f32.xlu1 %v395_v54 }
 0x4df   :  { %v397_v55 = vpop.xlane.xlu1 %396 }
 0x4e0   :  { %486 = vlog2.f32 %v397_v55 }
 0x4ea   :  { %v487_v56 = vpop.eup %486 }
 0x4eb   :  { %v399_v57 = vmul.f32 0.6931472, %v487_v56 }
 0x4ed   :  { %v401_v58 = vrot.slane %v399_v57, 1  ;;  %v404_v60 = vsub.f32 %v384_v46, %v399_v57 }
 0x4ef   :  { %v405_v59 = vsub.f32 %v385_v47, %v401_v58 }
 0x4f1   :  { %v408_v61 = vrot.slane %v405_v59, 7 }
 0x4f3   :  { %v409_v62 = vsel %vm339_vm10, %v408_v61, %v404_v60 }
 0x4f4   :  { %411 = vst.msk [vmem:[#allocation9] sm:$0x3] %vm342_vm11, %v409_v62 }
 0x4f5   :  { %555 = shalt.err (!%p552_p11)
}
 0x4f6   :  { %s556_s22 = scalar_lea.hbm %s713_s8, 32 }
 0x4f7   :  { %p557_p12 = scmp.ne.s32.totalorder %s713_s8, %s556_s22  ;;  %p560_p13 = scmp.lt.u32.totalorder %s556_s22, %s713_s8 }
 0x4f9   :  { %p562_p0 = pnand %p560_p13, %p557_p12 }
 0x4fb   :  { %565 = shalt.err (!%p562_p0)
}
 0x4fc   :  { %421 = dma.vmem_to_hbm [thread:$0]  %s419_s18, 32, %s713_s8, [#allocation4]  }
 0x4fd   :  { %572 = dma.done.wait [#allocation4], 32  }
 0x4fe   :  { %573 = vsyncadd [#allocation4], 4294967264 }
 0x4ff   :  { %425 = vsyncpa [#allocation3], 1 }
 0x500   :  { %426 = vsyncpa [#allocation8], 1 }
 0x501   :  { %427 = vsyncpa [#allocation4], 1 }
 0x502   :  { %428 = vsyncpa [#allocation5], 1 }

</bundles_post_ra>
